<compile_context>
chip_gen: v6e
topology: v6e:2x2x1
jax: 0.10.0
libtpu: 0.0.40
codegen_flags: <defaults>
</compile_context>

<pallas_src>
import functools

import jax
import jax.numpy as jnp
import numpy as np
from jax import lax
from jax.experimental import pallas as pl
from jax.experimental.pallas import tpu as pltpu

N_HIDDEN = 2          # n_hidden LayDRT blocks
LN_EPS = 1e-5         # torch.nn.LayerNorm default eps


def _round_up(x, m):
    return ((x + m - 1) // m) * m


def _cdiv(a, b):
    return (a + b - 1) // b


def sfeats_csf_kernel(x_ref, ln_in_g_ref, ln_in_b_ref, wp_t_ref,
                      lay_ln_g_ref, lay_ln_b_ref, lay_w_t_ref, lay_b_ref, wl_t_ref,
                      logits_ref, actmax_ref,
                      *, batch, block_batch, n_hidden):
    # feats tile (TB, F); rows past `batch` in the last (partial) block are unspecified.
    x = x_ref[...].astype(jnp.float32)

    # ---- EncDRT input LayerNorm over the feature axis (row-wise, F = full width) ----
    mu = jnp.mean(x, axis=-1, keepdims=True)
    var = jnp.mean((x - mu) ** 2, axis=-1, keepdims=True)          # biased var, like torch
    xn = (x - mu) * lax.rsqrt(var + LN_EPS) * ln_in_g_ref[...] + ln_in_b_ref[...]

    # ---- projection into the batch-on-lanes domain:  h = Wp^T . xn^T  -> (H, TB) ----
    # A.B^T contraction (same form as q.k^T): the layout flip happens on the MXU,
    # no explicit transpose / relayout is materialized.
    h = lax.dot_general(
        wp_t_ref[...], xn.astype(wp_t_ref.dtype),
        dimension_numbers=(((1,), (1,)), ((), ())),
        preferred_element_type=jnp.float32)                        # (H, TB)

    # Lane-validity mask, only needed when the last block is partial (garbage columns
    # must not pollute the dead-unit statistic; logits garbage columns are dropped by
    # the partial output-block writeback).
    if batch % block_batch != 0:
        col = lax.broadcasted_iota(jnp.int32, (1, block_batch), 1)
        valid = (pl.program_id(0) * block_batch + col) < batch      # (1, TB)
    else:
        valid = None

    # ---- n_hidden LayDRT blocks, fully lane-dense on (H, TB) tiles ----
    for i in range(n_hidden):                       # static python loop (n_hidden small)
        g = lay_ln_g_ref[i]                         # (H, 1)
        b = lay_ln_b_ref[i]                         # (H, 1)
        w_t = lay_w_t_ref[i]                        # (H, H) = W_i^T
        bias = lay_b_ref[i]                         # (H, 1)

        mu_h = jnp.mean(h, axis=0, keepdims=True)                   # (1, TB)
        var_h = jnp.mean((h - mu_h) ** 2, axis=0, keepdims=True)
        hn = (h - mu_h) * lax.rsqrt(var_h + LN_EPS) * g + b         # (H, TB)

        d = jnp.dot(w_t, hn.astype(w_t.dtype),
                    preferred_element_type=jnp.float32) + bias      # (H, TB)
        d = jnp.maximum(d, 0.0)                                     # ReLU

        # d >= 0, so max over (masked) batch lanes == 0  <=>  unit dead for this tile.
        d_stat = d if valid is None else jnp.where(valid, d, 0.0)
        actmax_ref[0, i, :] = jnp.max(d_stat, axis=1)               # (H,)

        h = h + d                                                   # residual (dropout = 0)

    # ---- classification head: logits^T = Wl^T . h -> (C, TB), lane-dense store ----
    logits_ref[...] = jnp.dot(wl_t_ref[...], h.astype(wl_t_ref.dtype),
                              preferred_element_type=jnp.float32)


def sfeats_csf_forward(feats, params, *, block_batch=4096, matmul_dtype=None):
    """Runs the SFeatsCSF forward pass with a batch-tiled, batch-on-lanes Pallas kernel.

    matmul_dtype: pass jnp.bfloat16 on v6e/v7x to use the native bf16 MXU path
    (LayerNorm / softmax math stays f32); default f32 keeps exact parity with torch
    (and avoids bf16 pack/unpack VPU work on v5e).
    """
    B, F = feats.shape
    H = params['wp'].shape[1]
    C = params['wl'].shape[1]
    n = params['lay_w'].shape[0]

    mm_dtype = params['wp'].dtype if matmul_dtype is None else matmul_dtype
    # One-time (tiny) weight prep: transpose into the batch-on-lanes layout.
    wp_t = params['wp'].T.astype(mm_dtype)                               # (H, F)
    lay_w_t = jnp.transpose(params['lay_w'], (0, 2, 1)).astype(mm_dtype)  # (n, H, H)
    wl_t = params['wl'].T.astype(mm_dtype)                               # (C, H)
    lay_ln_g = params['lay_ln_g'][..., None]                             # (n, H, 1)
    lay_ln_b = params['lay_ln_b'][..., None]
    lay_b = params['lay_b'][..., None]

    # Batch tile on the lane axis -> multiple of 128.  feats/logits tiles are tiny
    # (TB * F * 4 B), so even large TB stays far under scoped VMEM on every chip.
    TB = max(128, min(_round_up(block_batch, 128), _round_up(B, 128)))
    # v7x has 2 TensorCores: keep >= 2 tiles on the "parallel" batch axis when there
    # is enough work (costs at most one extra ~0.35us grid step on v5e/v6e).
    if B >= 256:
        TB = min(TB, _round_up(_cdiv(B, 2), 128))
    nt = _cdiv(B, TB)

    kernel = functools.partial(sfeats_csf_kernel,
                               batch=B, block_batch=TB, n_hidden=n)

    def _resident(shape):
        nd = len(shape)
        return pl.BlockSpec(shape, lambda i, nd=nd: (0,) * nd)   # DMA'd once, stays resident

    logits_t, actmax = pl.pallas_call(
        kernel,
        out_shape=(jax.ShapeDtypeStruct((C, B), jnp.float32),      # logits^T (lane-dense)
                   jax.ShapeDtypeStruct((nt, n, H), jnp.float32)), # per-tile activation max
        grid=(nt,),
        in_specs=[
            pl.BlockSpec((TB, F), lambda i: (i, 0)),   # feats: tiled over batch, native dtype
            _resident((1, F)),                         # ln_in_g
            _resident((1, F)),                         # ln_in_b
            _resident((H, F)),                         # wp^T
            _resident((n, H, 1)),                      # lay_ln_g (column vectors)
            _resident((n, H, 1)),                      # lay_ln_b
            _resident((n, H, H)),                      # lay_w^T
            _resident((n, H, 1)),                      # lay_b
            _resident((C, H)),                         # wl^T
        ],
        out_specs=(pl.BlockSpec((C, TB), lambda i: (0, i)),
                   pl.BlockSpec((1, n, H), lambda i: (i, 0, 0))),
        compiler_params=pltpu.CompilerParams(
            dimension_semantics=("parallel",),          # shard batch tiles across TCs (v7x)
            vmem_limit_bytes=32 * 1024 * 1024,          # safe ceiling on all generations
        ),
    )(feats,
      params['ln_in_g'], params['ln_in_b'], wp_t,
      lay_ln_g, lay_ln_b, lay_w_t, lay_b, wl_t)

    logits = logits_t.T                                 # tiny (C, B) -> (B, C) transpose

    # ---- Categorical(logits) tail in the wrapper (avoids lane-width-1/2 kernel stores) ----
    m = jnp.max(logits, axis=-1, keepdims=True)
    z = logits - m
    e = jnp.exp(z)
    s = jnp.sum(e, axis=-1, keepdims=True)
    probs = e / s
    log_probs = z - jnp.log(s)
    entropy = -jnp.sum(probs * log_probs, axis=-1)
    # TODO(synk): torch.argmax returns int64; JAX default is int32 (x64 disabled).
    preds = jnp.argmax(logits, axis=-1).astype(jnp.int32)

    # cross-tile reduction of the dead-unit statistic
    zeroes = (jnp.max(actmax, axis=0) == 0.0).astype(jnp.int8).reshape(-1)

    return {
        'logits': logits,
        'entropy': entropy,
        'probs': probs,
        'preds': preds,
        'zeroes': zeroes,              # matches torch int8 zeroes, layer-major concat
    }


def sfeats_csf_reference(feats, params):
    """Pure-JAX reference (same math, no Pallas) for correctness checking."""
    def _ln(v, g, b):
        mu = jnp.mean(v, axis=-1, keepdims=True)
        var = jnp.mean((v - mu) ** 2, axis=-1, keepdims=True)
        return (v - mu) * lax.rsqrt(var + LN_EPS) * g + b

    x = feats.astype(jnp.float32)
    h = _ln(x, params['ln_in_g'], params['ln_in_b'])
    h = h @ params['wp']
    zs, amax = [], []
    for i in range(params['lay_w'].shape[0]):
        hn = _ln(h, params['lay_ln_g'][i:i + 1], params['lay_ln_b'][i:i + 1])
        d = jnp.maximum(hn @ params['lay_w'][i] + params['lay_b'][i:i + 1], 0.0)
        am = jnp.max(d, axis=0)
        amax.append(am)
        zs.append((am == 0.0).astype(jnp.int8))
        h = h + d
    logits = h @ params['wl']
    m = jnp.max(logits, axis=-1, keepdims=True)
    z = logits - m
    e = jnp.exp(z)
    s = jnp.sum(e, axis=-1, keepdims=True)
    probs = e / s
    log_probs = z - jnp.log(s)
    return {
        'logits': logits,
        'entropy': -jnp.sum(probs * log_probs, axis=-1),
        'probs': probs,
        'preds': jnp.argmax(logits, axis=-1).astype(jnp.int32),
        'zeroes': jnp.concatenate(zs),
        'actmax': jnp.stack(amax),          # (n_hidden, H), for tolerant zeroes check
    }


def init_params(key, feats_width, hidden_width, num_classes, n_hidden=N_HIDDEN):
    # Deterministic synthetic init (stands in for torchness my_initializer).
    k0, k1, k2, k3 = jax.random.split(key, 4)
    scale = 0.1
    return dict(
        ln_in_g=jnp.ones((1, feats_width), jnp.float32),
        ln_in_b=jnp.zeros((1, feats_width), jnp.float32),
        wp=scale * jax.random.normal(k0, (feats_width, hidden_width), jnp.float32),
        lay_ln_g=jnp.ones((n_hidden, hidden_width), jnp.float32),
        lay_ln_b=jnp.zeros((n_hidden, hidden_width), jnp.float32),
        lay_w=scale * jax.random.normal(k1, (n_hidden, hidden_width, hidden_width),
                                        jnp.float32),
        lay_b=scale * jax.random.normal(k2, (n_hidden, hidden_width), jnp.float32),
        wl=scale * jax.random.normal(k3, (hidden_width, num_classes), jnp.float32),
    )


def _check(out, ref, B, H, C, n_hidden):
    assert out['logits'].shape == (B, C)
    assert out['probs'].shape == (B, C)
    assert out['entropy'].shape == (B,)
    assert out['preds'].shape == (B,)
    assert out['zeroes'].shape == (n_hidden * H,)

    np.testing.assert_allclose(np.asarray(out['logits']), np.asarray(ref['logits']),
                               rtol=2e-2, atol=2e-2)
    np.testing.assert_allclose(np.asarray(out['probs']), np.asarray(ref['probs']),
                               rtol=2e-2, atol=2e-2)
    np.testing.assert_allclose(np.asarray(out['entropy']), np.asarray(ref['entropy']),
                               rtol=2e-2, atol=2e-2)

    # argmax: allow disagreement only at near-ties of the reference logits
    srt = jnp.sort(ref['logits'], axis=-1)
    margin = srt[:, -1] - srt[:, -2]
    assert bool(jnp.all((out['preds'] == ref['preds']) | (margin < 5e-2)))

    # zeroes: allow disagreement only where the reference batch-max activation is
    # in the numerically ambiguous band just above zero
    ref_amax = ref['actmax'].reshape(-1)
    ambiguous = (ref_amax > 0.0) & (ref_amax < 1e-2)
    assert bool(jnp.all((out['zeroes'] == ref['zeroes']) | ambiguous))


if __name__ == "__main__":
    key = jax.random.PRNGKey(0)
    kx1, kx2, kp = jax.random.split(key, 3)

    # module defaults: hidden_width=12, n_hidden=2, num_classes=2
    B, F, H, C = 8, 32, 12, 2
    params = init_params(kp, F, H, C)

    # case 1: tiny batch, single (partial) grid step
    feats = jax.random.normal(kx1, (B, F), jnp.float32)
    out = sfeats_csf_forward(feats, params)
    jax.block_until_ready(out)
    _check(out, sfeats_csf_reference(feats, params), B, H, C, N_HIDDEN)

    # case 2: multi-tile batch grid with a partial (masked) last tile
    B2 = 300
    feats2 = jax.random.normal(kx2, (B2, F), jnp.float32)
    out2 = sfeats_csf_forward(feats2, params, block_batch=128)
    jax.block_until_ready(out2)
    _check(out2, sfeats_csf_reference(feats2, params), B2, H, C, N_HIDDEN)

    print("KERNEL_OK")
</pallas_src>

<mosaic_0001>
module attributes {stable_mosaic.version = 11 : i64} {
  func.func @sfeats_csf_kernel(%arg0: i32, %arg1: memref<128x32xf32, #tpu.memory_space<vmem>>, %arg2: memref<1x32xf32, #tpu.memory_space<vmem>>, %arg3: memref<1x32xf32, #tpu.memory_space<vmem>>, %arg4: memref<12x32xf32, #tpu.memory_space<vmem>>, %arg5: memref<2x12x1xf32, #tpu.memory_space<vmem>>, %arg6: memref<2x12x1xf32, #tpu.memory_space<vmem>>, %arg7: memref<2x12x12xf32, #tpu.memory_space<vmem>>, %arg8: memref<2x12x1xf32, #tpu.memory_space<vmem>>, %arg9: memref<2x12xf32, #tpu.memory_space<vmem>>, %arg10: memref<2x128xf32, #tpu.memory_space<vmem>>, %arg11: memref<1x2x12xf32, #tpu.memory_space<vmem>>) attributes {dimension_semantics = [#tpu.dimension_semantics<parallel>], iteration_bounds = array<i64: 1>, scalar_prefetch = 0 : i64, scratch_operands = 0 : i64, tpu.core_type = #tpu.core_type<tc>, window_params = [{transform_indices = @transform_0, window_bounds = array<i64: 128, 32>}, {pipeline_mode = #tpu.pipeline_mode<synchronous>, transform_indices = @transform_1, window_bounds = array<i64: 1, 32>}, {pipeline_mode = #tpu.pipeline_mode<synchronous>, transform_indices = @transform_2, window_bounds = array<i64: 1, 32>}, {pipeline_mode = #tpu.pipeline_mode<synchronous>, transform_indices = @transform_3, window_bounds = array<i64: 12, 32>}, {pipeline_mode = #tpu.pipeline_mode<synchronous>, transform_indices = @transform_4, window_bounds = array<i64: 2, 12, 1>}, {pipeline_mode = #tpu.pipeline_mode<synchronous>, transform_indices = @transform_5, window_bounds = array<i64: 2, 12, 1>}, {pipeline_mode = #tpu.pipeline_mode<synchronous>, transform_indices = @transform_6, window_bounds = array<i64: 2, 12, 12>}, {pipeline_mode = #tpu.pipeline_mode<synchronous>, transform_indices = @transform_7, window_bounds = array<i64: 2, 12, 1>}, {pipeline_mode = #tpu.pipeline_mode<synchronous>, transform_indices = @transform_8, window_bounds = array<i64: 2, 12>}, {transform_indices = @transform_9, window_bounds = array<i64: 2, 128>}, {transform_indices = @transform_10, window_bounds = array<i64: 1, 2, 12>}]} {
    %c0 = arith.constant 0 : index
    %c0_0 = arith.constant 0 : index
    %0 = vector.load %arg1[%c0, %c0_0] : memref<128x32xf32, #tpu.memory_space<vmem>>, vector<128x32xf32>
    %cst = arith.constant dense<0.000000e+00> : vector<128xf32>
    %1 = vector.multi_reduction <add>, %0, %cst [1] : vector<128x32xf32> to vector<128xf32>
    %2 = vector.shape_cast %1 : vector<128xf32> to vector<128x1xf32>
    %cst_1 = arith.constant 3.200000e+01 : f32
    %3 = vector.broadcast %cst_1 : f32 to vector<128x1xf32>
    %4 = arith.divf %2, %3 : vector<128x1xf32>
    %5 = vector.broadcast %4 : vector<128x1xf32> to vector<128x32xf32>
    %6 = arith.subf %0, %5 : vector<128x32xf32>
    %7 = arith.mulf %6, %6 : vector<128x32xf32>
    %cst_2 = arith.constant dense<0.000000e+00> : vector<128xf32>
    %8 = vector.multi_reduction <add>, %7, %cst_2 [1] : vector<128x32xf32> to vector<128xf32>
    %9 = vector.shape_cast %8 : vector<128xf32> to vector<128x1xf32>
    %cst_3 = arith.constant 3.200000e+01 : f32
    %10 = vector.broadcast %cst_3 : f32 to vector<128x1xf32>
    %11 = arith.divf %9, %10 : vector<128x1xf32>
    %12 = vector.broadcast %4 : vector<128x1xf32> to vector<128x32xf32>
    %13 = arith.subf %0, %12 : vector<128x32xf32>
    %cst_4 = arith.constant 9.99999974E-6 : f32
    %14 = vector.broadcast %cst_4 : f32 to vector<128x1xf32>
    %15 = arith.addf %11, %14 : vector<128x1xf32>
    %16 = math.rsqrt %15 : vector<128x1xf32>
    %17 = vector.broadcast %16 : vector<128x1xf32> to vector<128x32xf32>
    %18 = arith.mulf %13, %17 : vector<128x32xf32>
    %c0_5 = arith.constant 0 : index
    %c0_6 = arith.constant 0 : index
    %19 = vector.load %arg2[%c0_5, %c0_6] : memref<1x32xf32, #tpu.memory_space<vmem>>, vector<1x32xf32>
    %20 = vector.broadcast %19 : vector<1x32xf32> to vector<128x32xf32>
    %21 = arith.mulf %18, %20 : vector<128x32xf32>
    %c0_7 = arith.constant 0 : index
    %c0_8 = arith.constant 0 : index
    %22 = vector.load %arg3[%c0_7, %c0_8] : memref<1x32xf32, #tpu.memory_space<vmem>>, vector<1x32xf32>
    %23 = vector.broadcast %22 : vector<1x32xf32> to vector<128x32xf32>
    %24 = arith.addf %21, %23 : vector<128x32xf32>
    %c0_9 = arith.constant 0 : index
    %c0_10 = arith.constant 0 : index
    %25 = vector.load %arg4[%c0_9, %c0_10] : memref<12x32xf32, #tpu.memory_space<vmem>>, vector<12x32xf32>
    %cst_11 = arith.constant dense<0.000000e+00> : vector<12x128xf32>
    %26 = tpu.matmul %25, %24, %cst_11 {dimension_numbers = #tpu.dot_dimension_numbers<[1], [1], [0], [0], [0, 0, 1, 0], [], []>} : vector<12x32xf32>, vector<128x32xf32>, vector<12x128xf32> -> vector<12x128xf32>
    %27 = tpu.iota {dimensions = array<i32: 1>} : vector<1x128xi32>
    %c128_i32 = arith.constant 128 : i32
    %28 = arith.muli %arg0, %c128_i32 : i32
    %29 = vector.broadcast %28 : i32 to vector<1x128xi32>
    %30 = arith.addi %29, %27 : vector<1x128xi32>
    %c8_i32 = arith.constant 8 : i32
    %31 = vector.broadcast %c8_i32 : i32 to vector<1x128xi32>
    %32 = arith.cmpi slt, %30, %31 : vector<1x128xi32>
    %c0_12 = arith.constant 0 : index
    %c0_13 = arith.constant 0 : index
    %c0_14 = arith.constant 0 : index
    %33 = vector.load %arg5[%c0_12, %c0_13, %c0_14] : memref<2x12x1xf32, #tpu.memory_space<vmem>>, vector<1x12x1xf32>
    %34 = vector.shape_cast %33 : vector<1x12x1xf32> to vector<12x1xf32>
    %c0_15 = arith.constant 0 : index
    %c0_16 = arith.constant 0 : index
    %c0_17 = arith.constant 0 : index
    %35 = vector.load %arg6[%c0_15, %c0_16, %c0_17] : memref<2x12x1xf32, #tpu.memory_space<vmem>>, vector<1x12x1xf32>
    %36 = vector.shape_cast %35 : vector<1x12x1xf32> to vector<12x1xf32>
    %c0_18 = arith.constant 0 : index
    %c0_19 = arith.constant 0 : index
    %c0_20 = arith.constant 0 : index
    %37 = vector.load %arg7[%c0_18, %c0_19, %c0_20] : memref<2x12x12xf32, #tpu.memory_space<vmem>>, vector<1x12x12xf32>
    %38 = vector.shape_cast %37 : vector<1x12x12xf32> to vector<12x12xf32>
    %c0_21 = arith.constant 0 : index
    %c0_22 = arith.constant 0 : index
    %c0_23 = arith.constant 0 : index
    %39 = vector.load %arg8[%c0_21, %c0_22, %c0_23] : memref<2x12x1xf32, #tpu.memory_space<vmem>>, vector<1x12x1xf32>
    %40 = vector.shape_cast %39 : vector<1x12x1xf32> to vector<12x1xf32>
    %cst_24 = arith.constant dense<0.000000e+00> : vector<128xf32>
    %41 = vector.multi_reduction <add>, %26, %cst_24 [0] : vector<12x128xf32> to vector<128xf32>
    %42 = vector.shape_cast %41 : vector<128xf32> to vector<1x128xf32>
    %cst_25 = arith.constant 1.200000e+01 : f32
    %43 = vector.broadcast %cst_25 : f32 to vector<1x128xf32>
    %44 = arith.divf %42, %43 : vector<1x128xf32>
    %45 = vector.broadcast %44 : vector<1x128xf32> to vector<12x128xf32>
    %46 = arith.subf %26, %45 : vector<12x128xf32>
    %47 = arith.mulf %46, %46 : vector<12x128xf32>
    %cst_26 = arith.constant dense<0.000000e+00> : vector<128xf32>
    %48 = vector.multi_reduction <add>, %47, %cst_26 [0] : vector<12x128xf32> to vector<128xf32>
    %49 = vector.shape_cast %48 : vector<128xf32> to vector<1x128xf32>
    %cst_27 = arith.constant 1.200000e+01 : f32
    %50 = vector.broadcast %cst_27 : f32 to vector<1x128xf32>
    %51 = arith.divf %49, %50 : vector<1x128xf32>
    %52 = vector.broadcast %44 : vector<1x128xf32> to vector<12x128xf32>
    %53 = arith.subf %26, %52 : vector<12x128xf32>
    %cst_28 = arith.constant 9.99999974E-6 : f32
    %54 = vector.broadcast %cst_28 : f32 to vector<1x128xf32>
    %55 = arith.addf %51, %54 : vector<1x128xf32>
    %56 = math.rsqrt %55 : vector<1x128xf32>
    %57 = vector.broadcast %56 : vector<1x128xf32> to vector<12x128xf32>
    %58 = arith.mulf %53, %57 : vector<12x128xf32>
    %59 = vector.broadcast %34 : vector<12x1xf32> to vector<12x128xf32>
    %60 = arith.mulf %58, %59 : vector<12x128xf32>
    %61 = vector.broadcast %36 : vector<12x1xf32> to vector<12x128xf32>
    %62 = arith.addf %60, %61 : vector<12x128xf32>
    %cst_29 = arith.constant dense<0.000000e+00> : vector<12x128xf32>
    %63 = tpu.matmul %38, %62, %cst_29 {dimension_numbers = #tpu.dot_dimension_numbers<[1], [0], [0], [1], [0, 0, 1, 1], [], []>} : vector<12x12xf32>, vector<12x128xf32>, vector<12x128xf32> -> vector<12x128xf32>
    %64 = vector.broadcast %40 : vector<12x1xf32> to vector<12x128xf32>
    %65 = arith.addf %63, %64 : vector<12x128xf32>
    %cst_30 = arith.constant 0.000000e+00 : f32
    %66 = vector.broadcast %cst_30 : f32 to vector<12x128xf32>
    %67 = arith.maximumf %65, %66 : vector<12x128xf32>
    %cst_31 = arith.constant 0.000000e+00 : f32
    %68 = vector.shape_cast %32 : vector<1x128xi1> to vector<1x128xi1>
    %69 = vector.broadcast %68 : vector<1x128xi1> to vector<12x128xi1>
    %70 = vector.broadcast %cst_31 : f32 to vector<12x128xf32>
    %71 = arith.select %69, %67, %70 : vector<12x128xi1>, vector<12x128xf32>
    %cst_32 = arith.constant dense<0xFF800000> : vector<12xf32>
    %72 = vector.multi_reduction <maximumf>, %71, %cst_32 [1] : vector<12x128xf32> to vector<12xf32>
    %c0_33 = arith.constant 0 : index
    %c0_34 = arith.constant 0 : index
    %c0_35 = arith.constant 0 : index
    %73 = vector.load %arg11[%c0_33, %c0_34, %c0_35] : memref<1x2x12xf32, #tpu.memory_space<vmem>>, vector<1x1x12xf32>
    %74 = vector.shape_cast %73 : vector<1x1x12xf32> to vector<12xf32>
    %75 = vector.shape_cast %72 : vector<12xf32> to vector<1x1x12xf32>
    tpu.vector_store %arg11[%c0_33, %c0_34, %c0_35], %75 {strides = array<i32>} : memref<1x2x12xf32, #tpu.memory_space<vmem>>, vector<1x1x12xf32>,
    %76 = arith.addf %26, %67 : vector<12x128xf32>
    %c1 = arith.constant 1 : index
    %c0_36 = arith.constant 0 : index
    %c0_37 = arith.constant 0 : index
    %77 = vector.load %arg5[%c1, %c0_36, %c0_37] : memref<2x12x1xf32, #tpu.memory_space<vmem>>, vector<1x12x1xf32>
    %78 = vector.shape_cast %77 : vector<1x12x1xf32> to vector<12x1xf32>
    %c1_38 = arith.constant 1 : index
    %c0_39 = arith.constant 0 : index
    %c0_40 = arith.constant 0 : index
    %79 = vector.load %arg6[%c1_38, %c0_39, %c0_40] : memref<2x12x1xf32, #tpu.memory_space<vmem>>, vector<1x12x1xf32>
    %80 = vector.shape_cast %79 : vector<1x12x1xf32> to vector<12x1xf32>
    %c1_41 = arith.constant 1 : index
    %c0_42 = arith.constant 0 : index
    %c0_43 = arith.constant 0 : index
    %81 = vector.load %arg7[%c1_41, %c0_42, %c0_43] : memref<2x12x12xf32, #tpu.memory_space<vmem>>, vector<1x12x12xf32>
    %82 = vector.shape_cast %81 : vector<1x12x12xf32> to vector<12x12xf32>
    %c1_44 = arith.constant 1 : index
    %c0_45 = arith.constant 0 : index
    %c0_46 = arith.constant 0 : index
    %83 = vector.load %arg8[%c1_44, %c0_45, %c0_46] : memref<2x12x1xf32, #tpu.memory_space<vmem>>, vector<1x12x1xf32>
    %84 = vector.shape_cast %83 : vector<1x12x1xf32> to vector<12x1xf32>
    %cst_47 = arith.constant dense<0.000000e+00> : vector<128xf32>
    %85 = vector.multi_reduction <add>, %76, %cst_47 [0] : vector<12x128xf32> to vector<128xf32>
    %86 = vector.shape_cast %85 : vector<128xf32> to vector<1x128xf32>
    %cst_48 = arith.constant 1.200000e+01 : f32
    %87 = vector.broadcast %cst_48 : f32 to vector<1x128xf32>
    %88 = arith.divf %86, %87 : vector<1x128xf32>
    %89 = vector.broadcast %88 : vector<1x128xf32> to vector<12x128xf32>
    %90 = arith.subf %76, %89 : vector<12x128xf32>
    %91 = arith.mulf %90, %90 : vector<12x128xf32>
    %cst_49 = arith.constant dense<0.000000e+00> : vector<128xf32>
    %92 = vector.multi_reduction <add>, %91, %cst_49 [0] : vector<12x128xf32> to vector<128xf32>
    %93 = vector.shape_cast %92 : vector<128xf32> to vector<1x128xf32>
    %cst_50 = arith.constant 1.200000e+01 : f32
    %94 = vector.broadcast %cst_50 : f32 to vector<1x128xf32>
    %95 = arith.divf %93, %94 : vector<1x128xf32>
    %96 = vector.broadcast %88 : vector<1x128xf32> to vector<12x128xf32>
    %97 = arith.subf %76, %96 : vector<12x128xf32>
    %cst_51 = arith.constant 9.99999974E-6 : f32
    %98 = vector.broadcast %cst_51 : f32 to vector<1x128xf32>
    %99 = arith.addf %95, %98 : vector<1x128xf32>
    %100 = math.rsqrt %99 : vector<1x128xf32>
    %101 = vector.broadcast %100 : vector<1x128xf32> to vector<12x128xf32>
    %102 = arith.mulf %97, %101 : vector<12x128xf32>
    %103 = vector.broadcast %78 : vector<12x1xf32> to vector<12x128xf32>
    %104 = arith.mulf %102, %103 : vector<12x128xf32>
    %105 = vector.broadcast %80 : vector<12x1xf32> to vector<12x128xf32>
    %106 = arith.addf %104, %105 : vector<12x128xf32>
    %cst_52 = arith.constant dense<0.000000e+00> : vector<12x128xf32>
    %107 = tpu.matmul %82, %106, %cst_52 {dimension_numbers = #tpu.dot_dimension_numbers<[1], [0], [0], [1], [0, 0, 1, 1], [], []>} : vector<12x12xf32>, vector<12x128xf32>, vector<12x128xf32> -> vector<12x128xf32>
    %108 = vector.broadcast %84 : vector<12x1xf32> to vector<12x128xf32>
    %109 = arith.addf %107, %108 : vector<12x128xf32>
    %cst_53 = arith.constant 0.000000e+00 : f32
    %110 = vector.broadcast %cst_53 : f32 to vector<12x128xf32>
    %111 = arith.maximumf %109, %110 : vector<12x128xf32>
    %cst_54 = arith.constant 0.000000e+00 : f32
    %112 = vector.shape_cast %32 : vector<1x128xi1> to vector<1x128xi1>
    %113 = vector.broadcast %112 : vector<1x128xi1> to vector<12x128xi1>
    %114 = vector.broadcast %cst_54 : f32 to vector<12x128xf32>
    %115 = arith.select %113, %111, %114 : vector<12x128xi1>, vector<12x128xf32>
    %cst_55 = arith.constant dense<0xFF800000> : vector<12xf32>
    %116 = vector.multi_reduction <maximumf>, %115, %cst_55 [1] : vector<12x128xf32> to vector<12xf32>
    %c0_56 = arith.constant 0 : index
    %c1_57 = arith.constant 1 : index
    %c0_58 = arith.constant 0 : index
    %117 = vector.load %arg11[%c0_56, %c1_57, %c0_58] : memref<1x2x12xf32, #tpu.memory_space<vmem>>, vector<1x1x12xf32>
    %118 = vector.shape_cast %117 : vector<1x1x12xf32> to vector<12xf32>
    %119 = vector.shape_cast %116 : vector<12xf32> to vector<1x1x12xf32>
    tpu.vector_store %arg11[%c0_56, %c1_57, %c0_58], %119 {strides = array<i32>} : memref<1x2x12xf32, #tpu.memory_space<vmem>>, vector<1x1x12xf32>,
    %120 = arith.addf %76, %111 : vector<12x128xf32>
    %c0_59 = arith.constant 0 : index
    %c0_60 = arith.constant 0 : index
    %121 = vector.load %arg9[%c0_59, %c0_60] : memref<2x12xf32, #tpu.memory_space<vmem>>, vector<2x12xf32>
    %cst_61 = arith.constant dense<0.000000e+00> : vector<2x128xf32>
    %122 = tpu.matmul %121, %120, %cst_61 {dimension_numbers = #tpu.dot_dimension_numbers<[1], [0], [0], [1], [0, 0, 1, 1], [], []>} : vector<2x12xf32>, vector<12x128xf32>, vector<2x128xf32> -> vector<2x128xf32>
    %c0_62 = arith.constant 0 : index
    %c0_63 = arith.constant 0 : index
    %123 = vector.load %arg10[%c0_62, %c0_63] : memref<2x128xf32, #tpu.memory_space<vmem>>, vector<2x128xf32>
    tpu.vector_store %arg10[%c0_62, %c0_63], %122 {strides = array<i32>} : memref<2x128xf32, #tpu.memory_space<vmem>>, vector<2x128xf32>,
    return
  }
  func.func @transform_0(%arg0: i32) -> (i32, i32) {
    %c0_i32 = arith.constant 0 : i32
    %c0_i32_0 = arith.constant 0 : i32
    return %arg0, %c0_i32 : i32, i32
  }
  func.func @transform_1(%arg0: i32) -> (i32, i32) {
    %c0_i32 = arith.constant 0 : i32
    %c0_i32_0 = arith.constant 0 : i32
    %c0_i32_1 = arith.constant 0 : i32
    return %c0_i32, %c0_i32_0 : i32, i32
  }
  func.func @transform_2(%arg0: i32) -> (i32, i32) {
    %c0_i32 = arith.constant 0 : i32
    %c0_i32_0 = arith.constant 0 : i32
    %c0_i32_1 = arith.constant 0 : i32
    return %c0_i32, %c0_i32_0 : i32, i32
  }
  func.func @transform_3(%arg0: i32) -> (i32, i32) {
    %c0_i32 = arith.constant 0 : i32
    %c0_i32_0 = arith.constant 0 : i32
    %c0_i32_1 = arith.constant 0 : i32
    return %c0_i32, %c0_i32_0 : i32, i32
  }
  func.func @transform_4(%arg0: i32) -> (i32, i32, i32) {
    %c0_i32 = arith.constant 0 : i32
    %c0_i32_0 = arith.constant 0 : i32
    %c0_i32_1 = arith.constant 0 : i32
    %c0_i32_2 = arith.constant 0 : i32
    return %c0_i32, %c0_i32_0, %c0_i32_1 : i32, i32, i32
  }
  func.func @transform_5(%arg0: i32) -> (i32, i32, i32) {
    %c0_i32 = arith.constant 0 : i32
    %c0_i32_0 = arith.constant 0 : i32
    %c0_i32_1 = arith.constant 0 : i32
    %c0_i32_2 = arith.constant 0 : i32
    return %c0_i32, %c0_i32_0, %c0_i32_1 : i32, i32, i32
  }
  func.func @transform_6(%arg0: i32) -> (i32, i32, i32) {
    %c0_i32 = arith.constant 0 : i32
    %c0_i32_0 = arith.constant 0 : i32
    %c0_i32_1 = arith.constant 0 : i32
    %c0_i32_2 = arith.constant 0 : i32
    return %c0_i32, %c0_i32_0, %c0_i32_1 : i32, i32, i32
  }
  func.func @transform_7(%arg0: i32) -> (i32, i32, i32) {
    %c0_i32 = arith.constant 0 : i32
    %c0_i32_0 = arith.constant 0 : i32
    %c0_i32_1 = arith.constant 0 : i32
    %c0_i32_2 = arith.constant 0 : i32
    return %c0_i32, %c0_i32_0, %c0_i32_1 : i32, i32, i32
  }
  func.func @transform_8(%arg0: i32) -> (i32, i32) {
    %c0_i32 = arith.constant 0 : i32
    %c0_i32_0 = arith.constant 0 : i32
    %c0_i32_1 = arith.constant 0 : i32
    return %c0_i32, %c0_i32_0 : i32, i32
  }
  func.func @transform_9(%arg0: i32) -> (i32, i32) {
    %c0_i32 = arith.constant 0 : i32
    %c0_i32_0 = arith.constant 0 : i32
    return %c0_i32, %arg0 : i32, i32
  }
  func.func @transform_10(%arg0: i32) -> (i32, i32, i32) {
    %c0_i32 = arith.constant 0 : i32
    %c0_i32_0 = arith.constant 0 : i32
    %c0_i32_1 = arith.constant 0 : i32
    return %arg0, %c0_i32, %c0_i32_0 : i32, i32, i32
  }
}

</mosaic_0001>

<bundles_post_ra>
// kernel: tpu_custom_call.1
= control target key start
LH: loop header
LB: loop body
LE: loop exit
PB: predicated region body
PF: predicated region fallthrough
CT: control target
= control target key end

     0   :  { %16 = vsyncpa [#allocation3], 0  ;;  %vm52_vm0 = vcmask 261120   ;;  %s1565_s0 = inlined_call_operand.vmem [shape: f32[8,32], index: 0, kind: input, shape index: {}]   ;;  %s1566_s1 = inlined_call_operand.vmem [shape: f32[1,32], index: 1, kind: input, shape index: {}]   ;;  %s1567_s2 = inlined_call_operand.vmem [shape: f32[1,32], index: 2, kind: input, shape index: {}]   ;;  %s1568_s3 = inlined_call_operand.vmem [shape: f32[12,32], index: 3, kind: input, shape index: {}]   ;;  %s1569_s4 = inlined_call_operand.vmem [shape: f32[2,12,1], index: 4, kind: input, shape index: {}]   ;;  %s1570_s5 = inlined_call_operand.vmem [shape: f32[2,12,1], index: 5, kind: input, shape index: {}]   ;;  %s1571_s6 = inlined_call_operand.vmem [shape: f32[2,12,12], index: 6, kind: input, shape index: {}]   ;;  %s1572_s7 = inlined_call_operand.vmem [shape: f32[2,12,1], index: 7, kind: input, shape index: {}]   ;;  %s1573_s8 = inlined_call_operand.vmem [shape: f32[2,12], index: 8, kind: input, shape index: {}]   ;;  %s1574_s9 = inlined_call_operand.hbm [shape: f32[2,8], index: 9, kind: output, shape index: {0}]   ;;  %s1575_s10 = inlined_call_operand.hbm [shape: f32[1,2,12], index: 10, kind: output, shape index: {1}]  }
   0x1   :  { %v51_v0 = vld [vmem:[%s1565_s0 + $0x78] sm:$0xff]  ;;  %v50_v1 = vld [vmem:[%s1565_s0 + $0x70] sm:$0xff]  ;;  %v49_v2 = vld [vmem:[%s1565_s0 + $0x68] sm:$0xff] }
   0x2   :  { %v98_v3 = vsel %vm52_vm0, %v51_v0, 0.0  ;;  %v92_v4 = vsel %vm52_vm0, %v49_v2, 0.0  ;;  %v48_v5 = vld [vmem:[%s1565_s0 + $0x60] sm:$0xff]  ;;  %v95_v6 = vsel %vm52_vm0, %v50_v1, 0.0  ;;  %v47_v8 = vld [vmem:[%s1565_s0 + $0x58] sm:$0xff]  ;;  %v46_v9 = vld [vmem:[%s1565_s0 + $0x50] sm:$0xff] }
   0x3   :  { %99 = vadd.xlane.f32.xlu0 %v98_v3  ;;  %93 = vadd.xlane.f32.xlu1 %v92_v4  ;;  %v89_v7 = vsel %vm52_vm0, %v48_v5, 0.0 }
   0x4   :  { %17 = vsyncpa [#allocation5], 0  ;;  %v86_v10 = vsel %vm52_vm0, %v47_v8, 0.0  ;;  %v83_v11 = vsel %vm52_vm0, %v46_v9, 0.0  ;;  %v1210_v12 = vld [vmem:[%s1565_s0 + $0x48] sm:$0xff]  ;;  %v1215_v13 = vld [vmem:[%s1565_s0 + $0x40] sm:$0xff] }
   0x5   :  { %v80_v14 = vsel %vm52_vm0, %v1210_v12, 0.0  ;;  %v77_v15 = vsel %vm52_vm0, %v1215_v13, 0.0  ;;  %v1224_v16 = vld [vmem:[%s1565_s0 + $0x38] sm:$0xff]  ;;  %v1229_v17 = vld [vmem:[%s1565_s0 + $0x30] sm:$0xff]  ;;  %v1238_v20 = vld [vmem:[%s1565_s0 + $0x28] sm:$0xff]  ;;  %vm515_vm1 = vcmask 97280  }
   0x6   :  { %v74_v18 = vsel %vm52_vm0, %v1224_v16, 0.0  ;;  %v71_v19 = vsel %vm52_vm0, %v1229_v17, 0.0  ;;  %v1243_v21 = vld [vmem:[%s1565_s0 + $0x20] sm:$0xff]  ;;  %v68_v22 = vsel %vm52_vm0, %v1238_v20, 0.0  ;;  %v1252_v24 = vld [vmem:[%s1565_s0 + $0x18] sm:$0xff]  ;;  %v1257_v25 = vld [vmem:[%s1565_s0 + $0x10] sm:$0xff] }
   0x7   :  { %96 = vadd.xlane.f32.xlu0 %v95_v6  ;;  %90 = vadd.xlane.f32.xlu1 %v89_v7  ;;  %v65_v23 = vsel %vm52_vm0, %v1243_v21, 0.0  ;;  %v62_v26 = vsel %vm52_vm0, %v1252_v24, 0.0  ;;  %v59_v27 = vsel %vm52_vm0, %v1257_v25, 0.0  ;;  %v1266_v28 = vld [vmem:[%s1565_s0 + $0x8] sm:$0xff]  ;;  %v1271_v29 = vld [vmem:[%s1565_s0] sm:$0xff]  ;;  %vm453_vm2 = vcmask 1043456  }
   0x8   :  { %v56_v30 = vsel %vm52_vm0, %v1266_v28, 0.0  ;;  %v53_v31 = vsel %vm52_vm0, %v1271_v29, 0.0  ;;  %vm1125_vm4 = vmmov 0   ;;  %vm622_vm5 = vcmask 130112   ;;  %s1126_s18 = smov [#allocation4]  }
   0x9   :  { %vm625_vm6 = vcmask 90112   ;;  %s903_s19 = sshll.u32 %s1126_s18, 4  ;;  %s904_s19 = int_to_ptr.vmem [resolvable:$true] %s903_s19 }
   0xa   :  { %s1079_s20 = scalar_lea.vmem %s904_s19, 32  ;;  %p1084_p1 = scmp.lt.s32.totalorder %s904_s19, %s904_s19 }
   0xb   :  { %87 = vadd.xlane.f32.xlu0 %v86_v10  ;;  %84 = vadd.xlane.f32.xlu1 %v83_v11  ;;  %p1080_p0 = scmp.ne.s32.totalorder %s904_s19, %s1079_s20  ;;  %p1085_p2 = scmp.lt.s32.totalorder %s1079_s20, %s1079_s20 }
   0xd   :  { %p1086_p3 = por %p1085_p2, %p1084_p1 }
   0xf   :  { %81 = vadd.xlane.f32.xlu0 %v80_v14  ;;  %78 = vadd.xlane.f32.xlu1 %v77_v15  ;;  %p1087_p4 = pnand %p1086_p3, %p1080_p0 }
  0x13   :  { %75 = vadd.xlane.f32.xlu0 %v74_v18  ;;  %72 = vadd.xlane.f32.xlu1 %v71_v19 }
  0x17   :  { %69 = vadd.xlane.f32.xlu0 %v68_v22  ;;  %66 = vadd.xlane.f32.xlu1 %v65_v23 }
  0x1b   :  { %63 = vadd.xlane.f32.xlu0 %v62_v26  ;;  %60 = vadd.xlane.f32.xlu1 %v59_v27 }
  0x1f   :  { %57 = vadd.xlane.f32.xlu0 %v56_v30  ;;  %54 = vadd.xlane.f32.xlu1 %v53_v31 }
  0x8c   :  { %v100_v32 = vpop.xlane.xlu0 %99  ;;  %v94_v33 = vpop.xlane.xlu1 %93 }
  0x8d   :  { %v117_v34 = vmul.f32 0.03125, %v100_v32  ;;  %v115_v35 = vmul.f32 0.03125, %v94_v33 }
  0x8f   :  { %v1277_v36 = vsub.f32 %v51_v0, %v117_v34  ;;  %v1279_v37 = vsub.f32 %v49_v2, %v115_v35 }
  0x90   :  { %v97_v38 = vpop.xlane.xlu0 %96  ;;  %v91_v39 = vpop.xlane.xlu1 %90 }
  0x91   :  { %v116_v40 = vmul.f32 0.03125, %v97_v38  ;;  %v114_v41 = vmul.f32 0.03125, %v91_v39  ;;  %v149_v42 = vmul.f32 %v1277_v36, %v1277_v36  ;;  %v147_v43 = vmul.f32 %v1279_v37, %v1279_v37 }
  0x93   :  { %v1285_v44 = vsub.f32 %v50_v1, %v116_v40  ;;  %v1287_v45 = vsub.f32 %v48_v5, %v114_v41  ;;  %v195_v46 = vsel %vm52_vm0, %v149_v42, 0.0  ;;  %v189_v49 = vsel %vm52_vm0, %v147_v43, 0.0 }
  0x94   :  { %v88_v47 = vpop.xlane.xlu0 %87  ;;  %196 = vadd.xlane.f32.xlu0 %v195_v46  ;;  %v85_v48 = vpop.xlane.xlu1 %84 }
  0x95   :  { %v113_v50 = vmul.f32 0.03125, %v88_v47  ;;  %v112_v51 = vmul.f32 0.03125, %v85_v48  ;;  %v148_v52 = vmul.f32 %v1285_v44, %v1285_v44  ;;  %v146_v53 = vmul.f32 %v1287_v45, %v1287_v45 }
  0x97   :  { %v1295_v54 = vsub.f32 %v47_v8, %v113_v50  ;;  %v1297_v55 = vsub.f32 %v46_v9, %v112_v51  ;;  %v192_v56 = vsel %vm52_vm0, %v148_v52, 0.0  ;;  %v186_v59 = vsel %vm52_vm0, %v146_v53, 0.0  ;;  %v445_v53 = vld [vmem:[%s1569_s4] sm:$0xff] }
  0x98   :  { %v82_v57 = vpop.xlane.xlu0 %81  ;;  %190 = vadd.xlane.f32.xlu0 %v189_v49  ;;  %193 = vadd.xlane.f32.xlu1 %v192_v56  ;;  %v79_v58 = vpop.xlane.xlu1 %78  ;;  %v1123_v56 = vmov 0  }
  0x99   :  { %v111_v60 = vmul.f32 0.03125, %v82_v57  ;;  %v110_v61 = vmul.f32 0.03125, %v79_v58  ;;  %v145_v62 = vmul.f32 %v1295_v54, %v1295_v54  ;;  %v144_v63 = vmul.f32 %v1297_v55, %v1297_v55  ;;  %1042 = vset.pattern.permute.xlu1 %v1123_v56  ;;  %1041 = vset.pattern.permute.xlu0 %v1123_v56  ;;  %v446_v57 = vld [vmem:[%s1569_s4 + $0x8] sm:$0xf] }
  0x9a   :  { %v448_v58 = vld [vmem:[%s1570_s5 + $0x8] sm:$0xf] }
  0x9b   :  { %v1306_v0 = vsub.f32 %v1210_v12, %v111_v60  ;;  %v1309_v1 = vsub.f32 %v1215_v13, %v110_v61  ;;  %v183_v2 = vsel %vm52_vm0, %v145_v62, 0.0  ;;  %v180_v5 = vsel %vm52_vm0, %v144_v63, 0.0  ;;  %v447_v60 = vld [vmem:[%s1570_s5] sm:$0xff]  ;;  %v944_v61 = vld [vmem:[%s1572_s7 + $0x10] sm:$0xff]  ;;  %v452_v62 = vld [vmem:[%s1572_s7 + $0x8] sm:$0xf] }
  0x9c   :  { %v76_v3 = vpop.xlane.xlu0 %75  ;;  %184 = vadd.xlane.f32.xlu0 %v183_v2  ;;  %187 = vadd.xlane.f32.xlu1 %v186_v59  ;;  %v73_v4 = vpop.xlane.xlu1 %72  ;;  %v940_v59 = vld [vmem:[%s1570_s5 + $0x10] sm:$0xff]  ;;  %v451_v63 = vld [vmem:[%s1572_s7] sm:$0xff]  ;;  %v939_v2 = vld [vmem:[%s1569_s4 + $0x18] sm:$0xf] }
  0x9d   :  { %v109_v6 = vmul.f32 0.03125, %v76_v3  ;;  %v108_v7 = vmul.f32 0.03125, %v73_v4  ;;  %v143_v8 = vmul.f32 %v1306_v0, %v1306_v0  ;;  %v142_v9 = vmul.f32 %v1309_v1, %v1309_v1  ;;  %v938_v3 = vld [vmem:[%s1569_s4 + $0x10] sm:$0xff]  ;;  %v941_v4 = vld [vmem:[%s1570_s5 + $0x18] sm:$0xf] }
  0x9f   :  { %v1318_v10 = vsub.f32 %v1224_v16, %v109_v6  ;;  %v1321_v11 = vsub.f32 %v1229_v17, %v108_v7  ;;  %v177_v12 = vsel %vm52_vm0, %v143_v8, 0.0  ;;  %v174_v15 = vsel %vm52_vm0, %v142_v9, 0.0 }
  0xa0   :  { %v70_v13 = vpop.xlane.xlu0 %69  ;;  %178 = vadd.xlane.f32.xlu0 %v177_v12  ;;  %181 = vadd.xlane.f32.xlu1 %v180_v5  ;;  %v67_v14 = vpop.xlane.xlu1 %66  ;;  %v945_v5 = vld [vmem:[%s1572_s7 + $0x18] sm:$0xf] }
  0xa1   :  { %v107_v18 = vmul.f32 0.03125, %v70_v13  ;;  %v106_v19 = vmul.f32 0.03125, %v67_v14  ;;  %v141_v22 = vmul.f32 %v1318_v10, %v1318_v10  ;;  %v140_v16 = vmul.f32 %v1321_v11, %v1321_v11 }
  0xa3   :  { %v1330_v23 = vsub.f32 %v1238_v20, %v107_v18  ;;  %v1333_v17 = vsub.f32 %v1243_v21, %v106_v19  ;;  %v171_v26 = vsel %vm52_vm0, %v141_v22, 0.0  ;;  %v168_v31 = vsel %vm52_vm0, %v140_v16, 0.0 }
  0xa4   :  { %v64_v27 = vpop.xlane.xlu0 %63  ;;  %172 = vadd.xlane.f32.xlu0 %v171_v26  ;;  %175 = vadd.xlane.f32.xlu1 %v174_v15  ;;  %v61_v30 = vpop.xlane.xlu1 %60 }
  0xa5   :  { %v105_v32 = vmul.f32 0.03125, %v64_v27  ;;  %v104_v33 = vmul.f32 0.03125, %v61_v30  ;;  %v139_v34 = vmul.f32 %v1330_v23, %v1330_v23  ;;  %v138_v20 = vmul.f32 %v1333_v17, %v1333_v17 }
  0xa7   :  { %v1342_v35 = vsub.f32 %v1252_v24, %v105_v32  ;;  %v1345_v21 = vsub.f32 %v1257_v25, %v104_v33  ;;  %v165_v38 = vsel %vm52_vm0, %v139_v34, 0.0  ;;  %v162_v40 = vsel %vm52_vm0, %v138_v20, 0.0 }
  0xa8   :  { %166 = vadd.xlane.f32.xlu0 %v165_v38  ;;  %v58_v39 = vpop.xlane.xlu0 %57  ;;  %169 = vadd.xlane.f32.xlu1 %v168_v31  ;;  %v55_v41 = vpop.xlane.xlu1 %54 }
  0xa9   :  { %v103_v42 = vmul.f32 0.03125, %v58_v39  ;;  %v137_v43 = vmul.f32 %v1342_v35, %v1342_v35  ;;  %v102_v46 = vmul.f32 0.03125, %v55_v41  ;;  %v136_v24 = vmul.f32 %v1345_v21, %v1345_v21 }
  0xab   :  { %v1354_v47 = vsub.f32 %v1266_v28, %v103_v42  ;;  %v159_v25 = vsel %vm52_vm0, %v137_v43, 0.0  ;;  %v1358_v48 = vsub.f32 %v1271_v29, %v102_v46  ;;  %v156_v50 = vsel %vm52_vm0, %v136_v24, 0.0  ;;  %v308_v29 = vld [vmem:[%s1568_s3] sm:$0xff] }
  0xac   :  { %160 = vadd.xlane.f32.xlu0 %v159_v25  ;;  %163 = vadd.xlane.f32.xlu1 %v162_v40  ;;  %v1410_v43 = vld [vmem:[%s1566_s1] ss:$0 sm:$0xff] }
  0xad   :  { %v135_v49 = vmul.f32 %v1354_v47, %v1354_v47  ;;  %v134_v51 = vmul.f32 %v1358_v48, %v1358_v48  ;;  %1012 = vmatprep.mubr.msk.f32.mxu0 %vm52_vm0, %v308_v29  ;;  %v1416_v24 = vld [vmem:[%s1567_s2] ss:$0 sm:$0xff] }
  0xaf   :  { %v153_v52 = vsel %vm52_vm0, %v135_v49, 0.0  ;;  %v150_v28 = vsel %vm52_vm0, %v134_v51, 0.0 }
  0xb0   :  { %154 = vadd.xlane.f32.xlu0 %v153_v52  ;;  %157 = vadd.xlane.f32.xlu1 %v156_v50 }
  0xb4   :  { %151 = vadd.xlane.f32.xlu1 %v150_v28 }
  0xc5   :  { %483 = vperm.xlu1 %1042, %v445_v53  }
  0xc6   :  { %488 = vperm.xlu0 %1041, %v446_v57  }
  0xc9   :  { %500 = vperm.xlu1 %1042, %v448_v58  }
  0xca   :  { %681 = vperm.xlu0 %1041, %v940_v59  }
  0xcd   :  { %495 = vperm.xlu1 %1042, %v447_v60  }
  0xce   :  { %693 = vperm.xlu0 %1041, %v944_v61  }
  0xd1   :  { %512 = vperm.xlu1 %1042, %v452_v62  }
  0xd5   :  { %507 = vperm.xlu1 %1042, %v451_v63  }
  0xd9   :  { %674 = vperm.xlu1 %1042, %v939_v2  }
  0xdd   :  { %669 = vperm.xlu1 %1042, %v938_v3  }
  0xe1   :  { %686 = vperm.xlu1 %1042, %v941_v4  }
  0xe5   :  { %698 = vperm.xlu1 %1042, %v945_v5  }
 0x11d   :  { %v197_v6 = vpop.xlane.xlu0 %196 }
 0x11e   :  { %v213_v7 = vmul.f32 0.03125, %v197_v6 }
 0x120   :  { %v229_v8 = vadd.f32 1e-05, %v213_v7 }
 0x121   :  { %v191_v9 = vpop.xlane.xlu0 %190  ;;  %v194_v12 = vpop.xlane.xlu1 %193 }
 0x122   :  { %1043 = vrsqrt.f32 %v229_v8  ;;  %v211_v13 = vmul.f32 0.03125, %v191_v9  ;;  %v212_v14 = vmul.f32 0.03125, %v194_v12 }
 0x124   :  { %v227_v15 = vadd.f32 1e-05, %v211_v13  ;;  %v228_v18 = vadd.f32 1e-05, %v212_v14 }
 0x125   :  { %v185_v19 = vpop.xlane.xlu0 %184  ;;  %v188_v22 = vpop.xlane.xlu1 %187 }
 0x126   :  { %1045 = vrsqrt.f32 %v227_v15  ;;  %v209_v16 = vmul.f32 0.03125, %v185_v19  ;;  %v210_v26 = vmul.f32 0.03125, %v188_v22 }
 0x127   :  { %1047 = vrsqrt.f32 %v228_v18 }
 0x128   :  { %v225_v27 = vadd.f32 1e-05, %v209_v16  ;;  %v226_v30 = vadd.f32 1e-05, %v210_v26 }
 0x129   :  { %v179_v31 = vpop.xlane.xlu0 %178  ;;  %v182_v32 = vpop.xlane.xlu1 %181 }
 0x12a   :  { %1049 = vrsqrt.f32 %v225_v27  ;;  %v208_v33 = vmul.f32 0.03125, %v182_v32  ;;  %v207_v34 = vmul.f32 0.03125, %v179_v31 }
 0x12b   :  { %1051 = vrsqrt.f32 %v226_v30 }
 0x12c   :  { %v224_v20 = vadd.f32 1e-05, %v208_v33  ;;  %v223_v40 = vadd.f32 1e-05, %v207_v34 }
 0x12d   :  { %v176_v38 = vpop.xlane.xlu1 %175  ;;  %v173_v41 = vpop.xlane.xlu0 %172 }
 0x12e   :  { %1053 = vrsqrt.f32 %v224_v20  ;;  %v206_v42 = vmul.f32 0.03125, %v176_v38  ;;  %v205_v25 = vmul.f32 0.03125, %v173_v41 }
 0x12f   :  { %v1044_v39 = vpop.eup %1043  ;;  %1055 = vrsqrt.f32 %v223_v40 }
 0x130   :  { %v261_v46 = vmul.f32 %v1044_v39, %v1277_v36  ;;  %v222_v51 = vadd.f32 1e-05, %v206_v42  ;;  %v221_v36 = vadd.f32 1e-05, %v205_v25 }
 0x131   :  { %v170_v28 = vpop.xlane.xlu1 %169  ;;  %v167_v58 = vpop.xlane.xlu0 %166 }
 0x132   :  { %v284_v49 = vmul.f32 %v1410_v43, %v261_v46  ;;  %1057 = vrsqrt.f32 %v222_v51  ;;  %v204_v59 = vmul.f32 0.03125, %v170_v28 }
 0x133   :  { %v1046_v50 = vpop.eup %1045  ;;  %1059 = vrsqrt.f32 %v221_v36 }
 0x134   :  { %v1048_v52 = vpop.eup %1047  ;;  %v307_v29 = vadd.f32 %v1416_v24, %v284_v49  ;;  %v259_v53 = vmul.f32 %v1046_v50, %v1279_v37  ;;  %v220_v2 = vadd.f32 1e-05, %v204_v59 }
 0x135   :  { %v260_v56 = vmul.f32 %v1048_v52, %v1285_v44  ;;  %v203_v44 = vmul.f32 0.03125, %v167_v58  ;;  %v164_v3 = vpop.xlane.xlu1 %163 }
 0x136   :  { %980 = vmatprep.subr.msk.mxu0 %vm52_vm0, %v307_v29  ;;  %v282_v61 = vmul.f32 %v1410_v43, %v259_v53  ;;  %v202_v9 = vmul.f32 0.03125, %v164_v3  ;;  %1061 = vrsqrt.f32 %v220_v2 }
 0x137   :  { %v1050_v57 = vpop.eup %1049  ;;  %981 = vmatpush3.xpose.msk.msra.mxu0 %vm52_vm0, %v307_v29  ;;  %v283_v60 = vmul.f32 %v1410_v43, %v260_v56  ;;  %v219_v8 = vadd.f32 1e-05, %v203_v44 }
 0x138   :  { %v1052_v62 = vpop.eup %1051  ;;  %v305_v4 = vadd.f32 %v1416_v24, %v282_v61  ;;  %v257_v6 = vmul.f32 %v1050_v57, %v1295_v54  ;;  %v218_v18 = vadd.f32 1e-05, %v202_v9 }
 0x139   :  { %v306_v63 = vadd.f32 %v1416_v24, %v283_v60  ;;  %v258_v37 = vmul.f32 %v1052_v62, %v1287_v45  ;;  %v161_v45 = vpop.xlane.xlu0 %160  ;;  %1063 = vrsqrt.f32 %v219_v8  ;;  %v158_v19 = vpop.xlane.xlu1 %157 }
 0x13a   :  { %v280_v13 = vmul.f32 %v1410_v43, %v257_v6  ;;  %v201_v54 = vmul.f32 0.03125, %v161_v45  ;;  %v200_v30 = vmul.f32 0.03125, %v158_v19  ;;  %1065 = vrsqrt.f32 %v218_v18 }
 0x13b   :  { %982 = vmatprep.subr.msk.mxu0 %vm52_vm0, %v306_v63  ;;  %v281_v5 = vmul.f32 %v1410_v43, %v258_v37  ;;  %v1054_v7 = vpop.eup %1053 }
 0x13c   :  { %983 = vmatpush3.xpose.msk.msra.mxu0 %vm52_vm0, %v306_v63  ;;  %v256_v14 = vmul.f32 %v1054_v7, %v1297_v55  ;;  %v1056_v15 = vpop.eup %1055  ;;  %v303_v22 = vadd.f32 %v1416_v24, %v280_v13  ;;  %v217_v55 = vadd.f32 1e-05, %v201_v54  ;;  %v216_v38 = vadd.f32 1e-05, %v200_v30 }
 0x13d   :  { %984 = vmatprep.subr.msk.mxu0 %vm52_vm0, %v305_v4  ;;  %v304_v12 = vadd.f32 %v1416_v24, %v281_v5  ;;  %v255_v26 = vmul.f32 %v1056_v15, %v1306_v0  ;;  %v155_v32 = vpop.xlane.xlu0 %154  ;;  %v152_v39 = vpop.xlane.xlu1 %151 }
 0x13e   :  { %v279_v16 = vmul.f32 %v1410_v43, %v256_v14  ;;  %1067 = vrsqrt.f32 %v217_v55  ;;  %v199_v0 = vmul.f32 0.03125, %v155_v32  ;;  %v198_v25 = vmul.f32 0.03125, %v152_v39 }
 0x13f   :  { %v1058_v27 = vpop.eup %1057  ;;  %v278_v34 = vmul.f32 %v1410_v43, %v255_v26  ;;  %1069 = vrsqrt.f32 %v216_v38 }
 0x140   :  { %985 = vmatpush3.xpose.msk.msra.mxu0 %vm52_vm0, %v305_v4  ;;  %v1060_v31 = vpop.eup %1059  ;;  %v302_v33 = vadd.f32 %v1416_v24, %v279_v16  ;;  %v254_v20 = vmul.f32 %v1058_v27, %v1309_v1  ;;  %v215_v1 = vadd.f32 1e-05, %v199_v0 }
 0x141   :  { %986 = vmatprep.subr.msk.mxu0 %vm52_vm0, %v304_v12  ;;  %v301_v40 = vadd.f32 %v1416_v24, %v278_v34  ;;  %v253_v42 = vmul.f32 %v1060_v31, %v1318_v10  ;;  %v214_v10 = vadd.f32 1e-05, %v198_v25  ;;  %v489_v25 = vpop.permute.xlu0 %488 }
 0x142   :  { %v277_v41 = vmul.f32 %v1410_v43, %v254_v20  ;;  %1071 = vrsqrt.f32 %v215_v1 }
 0x143   :  { %v1062_v46 = vpop.eup %1061  ;;  %v276_v51 = vmul.f32 %v1410_v43, %v253_v42  ;;  %1073 = vrsqrt.f32 %v214_v10 }
 0x144   :  { %987 = vmatpush3.xpose.msk.msra.mxu0 %vm52_vm0, %v304_v12  ;;  %v300_v50 = vadd.f32 %v1416_v24, %v277_v41  ;;  %v252_v52 = vmul.f32 %v1062_v46, %v1321_v11 }
 0x145   :  { %988 = vmatprep.subr.msk.mxu0 %vm52_vm0, %v303_v22  ;;  %v299_v28 = vadd.f32 %v1416_v24, %v276_v51 }
 0x146   :  { %v1064_v49 = vpop.eup %1063  ;;  %v275_v29 = vmul.f32 %v1410_v43, %v252_v52 }
 0x147   :  { %v251_v53 = vmul.f32 %v1064_v49, %v1330_v23  ;;  %v1066_v56 = vpop.eup %1065 }
 0x148   :  { %989 = vmatpush3.xpose.msk.msra.mxu0 %vm52_vm0, %v303_v22  ;;  %v298_v11 = vadd.f32 %v1416_v24, %v275_v29  ;;  %v250_v58 = vmul.f32 %v1066_v56, %v1333_v17  ;;  %v942_v29 = vld [vmem:[%s1571_s6 + $0x10] sm:$0xff] }
 0x149   :  { %990 = vmatprep.subr.msk.mxu0 %vm52_vm0, %v302_v33  ;;  %v274_v57 = vmul.f32 %v1410_v43, %v251_v53  ;;  %v439_v53 = vlaneseq }
 0x14a   :  { %v273_v23 = vmul.f32 %v1410_v43, %v250_v58 }
 0x14b   :  { %v1068_v36 = vpop.eup %1067  ;;  %v297_v59 = vadd.f32 %v1416_v24, %v274_v57 }
 0x14c   :  { %991 = vmatpush3.xpose.msk.msra.mxu0 %vm52_vm0, %v302_v33  ;;  %v249_v60 = vmul.f32 %v1068_v36, %v1342_v35  ;;  %v1070_v61 = vpop.eup %1069  ;;  %v296_v63 = vadd.f32 %v1416_v24, %v273_v23  ;;  %v1517_v36 = vand.u32 127, %v439_v53 }
 0x14d   :  { %992 = vmatprep.subr.msk.mxu0 %vm52_vm0, %v301_v40  ;;  %v248_v37 = vmul.f32 %v1070_v61, %v1345_v21 }
 0x14e   :  { %v272_v17 = vmul.f32 %v1410_v43, %v249_v60  ;;  %vm444_vm3 = vcmp.lt.s32.totalorder %v1517_v36, 8 }
 0x14f   :  { %v1072_v62 = vpop.eup %1071  ;;  %v271_v35 = vmul.f32 %v1410_v43, %v248_v37 }
 0x150   :  { %993 = vmatpush3.xpose.msk.msra.mxu0 %vm52_vm0, %v301_v40  ;;  %v295_v44 = vadd.f32 %v1416_v24, %v272_v17  ;;  %v247_v2 = vmul.f32 %v1072_v62, %v1354_v47  ;;  %v1074_v3 = vpop.eup %1073  ;;  %v484_v40 = vpop.permute.xlu1 %483 }
 0x151   :  { %994 = vmatprep.subr.msk.mxu0 %vm52_vm0, %v300_v50  ;;  %v294_v4 = vadd.f32 %v1416_v24, %v271_v35  ;;  %v246_v21 = vmul.f32 %v1074_v3, %v1358_v48  ;;  %v309_v48 = vld [vmem:[%s1568_s3 + $0x8] sm:$0xf] }
 0x152   :  { %v270_v5 = vmul.f32 %v1410_v43, %v247_v2 }
 0x153   :  { %v269_v7 = vmul.f32 %v1410_v43, %v246_v21  ;;  %v449_v43 = vld [vmem:[%s1571_s6] sm:$0xff] }
 0x154   :  { %995 = vmatpush3.xpose.msk.msra.mxu0 %vm52_vm0, %v300_v50  ;;  %v293_v6 = vadd.f32 %v1416_v24, %v270_v5  ;;  %1019 = vmatprep.mubr.msk.f32.mxu1 %vm515_vm1, %v449_v43  ;;  %v501_v42 = vpop.permute.xlu1 %500 }
 0x155   :  { %996 = vmatprep.subr.msk.mxu0 %vm52_vm0, %v299_v28  ;;  %v292_v47 = vadd.f32 %v1416_v24, %v269_v7 }
 0x158   :  { %997 = vmatpush3.xpose.msk.msra.mxu0 %vm52_vm0, %v299_v28  ;;  %v496_v52 = vpop.permute.xlu1 %495  ;;  %v450_v28 = vld [vmem:[%s1571_s6 + $0x8] sm:$0xf] }
 0x159   :  { %998 = vmatprep.subr.msk.mxu0 %vm52_vm0, %v298_v11 }
 0x15c   :  { %999 = vmatpush3.xpose.msk.msra.mxu0 %vm52_vm0, %v298_v11  ;;  %v513_v56 = vpop.permute.xlu1 %512 }
 0x15d   :  { %1000 = vmatprep.subr.msk.mxu0 %vm52_vm0, %v297_v59 }
 0x160   :  { %1001 = vmatpush3.xpose.msk.msra.mxu0 %vm52_vm0, %v297_v59  ;;  %v508_v58 = vpop.permute.xlu1 %507 }
 0x161   :  { %1002 = vmatprep.subr.msk.mxu0 %vm52_vm0, %v296_v63 }
 0x164   :  { %1003 = vmatpush3.xpose.msk.msra.mxu0 %vm52_vm0, %v296_v63 }
 0x165   :  { %1004 = vmatprep.subr.msk.mxu0 %vm52_vm0, %v295_v44 }
 0x168   :  { %1005 = vmatpush3.xpose.msk.msra.mxu0 %vm52_vm0, %v295_v44 }
 0x169   :  { %1006 = vmatprep.subr.msk.mxu0 %vm52_vm0, %v294_v4 }
 0x16c   :  { %1007 = vmatpush3.xpose.msk.msra.mxu0 %vm52_vm0, %v294_v4 }
 0x16d   :  { %1008 = vmatprep.subr.msk.mxu0 %vm52_vm0, %v293_v6 }
 0x170   :  { %1009 = vmatpush3.xpose.msk.msra.mxu0 %vm52_vm0, %v293_v6 }
 0x171   :  { %1010 = vmatprep.subr.msk.mxu0 %vm52_vm0, %v292_v47 }
 0x174   :  { %1011 = vmatpush3.xpose.msk.msra.mxu0 %vm52_vm0, %v292_v47 }
 0x177   :  { %1013 = vmatmul.mubr.msk.f32.vlgmr.msra.gmra.mxu0 %vm52_vm0, %v309_v48 }
 0x237   :  { %v1014_v24 = vpop.f32.mrf.mxu0 }
 0x238   :  { %v454_v8 = vsel %vm453_vm2, %v1014_v24, 0.0 }
 0x239   :  { %v430_v9 = vpop.f32.mrf.mxu0 }
 0x23a   :  { %v455_v45 = vadd.f32 %v454_v8, %v430_v9 }
 0x23c   :  { %v456_v12 = vrot.slane %v455_v45, 4 }
 0x23e   :  { %v457_v13 = vadd.f32 %v456_v12, %v455_v45 }
 0x240   :  { %v458_v14 = vrot.slane %v457_v13, 2 }
 0x242   :  { %v459_v15 = vadd.f32 %v458_v14, %v457_v13 }
 0x244   :  { %v460_v54 = vrot.slane %v459_v15, 1 }
 0x246   :  { %v461_v18 = vadd.f32 %v460_v54, %v459_v15 }
 0x248   :  { %v463_v19 = vmul.f32 0.083333336, %v461_v18 }
 0x24a   :  { %v464_v22 = vsub.f32 %v430_v9, %v463_v19  ;;  %v465_v16 = vsub.f32 %v1014_v24, %v463_v19 }
 0x24c   :  { %v466_v26 = vmul.f32 %v464_v22, %v464_v22  ;;  %v467_v27 = vmul.f32 %v465_v16, %v465_v16 }
 0x24e   :  { %v468_v55 = vsel %vm453_vm2, %v467_v27, 0.0 }
 0x24f   :  { %v469_v30 = vadd.f32 %v468_v55, %v466_v26 }
 0x251   :  { %v470_v31 = vrot.slane %v469_v30, 4 }
 0x253   :  { %v471_v32 = vadd.f32 %v470_v31, %v469_v30 }
 0x255   :  { %v472_v33 = vrot.slane %v471_v32, 2 }
 0x257   :  { %v473_v34 = vadd.f32 %v472_v33, %v471_v32 }
 0x259   :  { %v474_v20 = vrot.slane %v473_v34, 1 }
 0x25b   :  { %v475_v0 = vadd.f32 %v474_v20, %v473_v34  ;;  %v682_v20 = vpop.permute.xlu0 %681 }
 0x25d   :  { %v476_v38 = vmul.f32 0.083333336, %v475_v0 }
 0x25f   :  { %v477_v39 = vadd.f32 1e-05, %v476_v38  ;;  %v943_v38 = vld [vmem:[%s1571_s6 + $0x18] sm:$0xf] }
 0x261   :  { %1075 = vrsqrt.f32 %v477_v39  ;;  %v614_v39 = vshrl.u32 %v439_v53, 7 }
 0x26e   :  { %v1076_v41 = vpop.eup %1075 }
 0x26f   :  { %v479_v46 = vmul.f32 %v1076_v41, %v464_v22  ;;  %v480_v1 = vmul.f32 %v1076_v41, %v465_v16  ;;  %v675_v16 = vpop.permute.xlu1 %674  ;;  %v694_v41 = vpop.permute.xlu0 %693 }
 0x271   :  { %v491_v49 = vmul.f32 %v484_v40, %v479_v46  ;;  %v492_v50 = vmul.f32 %v489_v25, %v480_v1  ;;  %v617_v40 = vadd.s32 4294967288, %v1517_v36  ;;  %v615_v1 = vsub.s32 %v1517_v36, %v614_v39 }
 0x272   :  { %v1124_v25 = vmov 0.0  }
 0x273   :  { %v504_v51 = vadd.f32 %v501_v42, %v492_v50  ;;  %v503_v10 = vadd.f32 %v496_v52, %v491_v49  ;;  %v670_v26 = vpop.permute.xlu1 %669  ;;  %v620_v46 = vsub.s32 %v617_v40, %v614_v39 }
 0x275   :  { %1015 = vmatprep.subr.msk.mxu1 %vm453_vm2, %v504_v51 }
 0x276   :  { %1016 = vmatpush3.msk.msra.mxu1 %vm453_vm2, %v504_v51 }
 0x277   :  { %1017 = vmatprep.subr.mxu1 %v503_v10  ;;  %v687_v33 = vpop.permute.xlu1 %686 }
 0x278   :  { %1018 = vmatpush3.msra.mxu1 %v503_v10 }
 0x279   :  { %1020 = vmatmul.mubr.msk.f32.vlgmr.msra.gmra.mxu1 %vm515_vm1, %v450_v28 }
 0x27a   :  { %1026 = vmatprep.mubr.msk.f32.mxu1 %vm515_vm1, %v942_v29 }
 0x27b   :  { %v699_v42 = vpop.permute.xlu1 %698 }
 0x339   :  { %v1021_v11 = vpop.f32.mrf.mxu1 }
 0x33a   :  { %v597_v57 = vadd.f32 %v1021_v11, %v513_v56 }
 0x33b   :  { %v591_v59 = vpop.f32.mrf.mxu1 }
 0x33c   :  { %v601_v23 = vmax.f32 %v597_v57, 0.0  ;;  %v592_v60 = vadd.f32 %v591_v59, %v508_v58 }
 0x33e   :  { %v1520_v61 = vadd.f32 %v1014_v24, %v601_v23  ;;  %v600_v62 = vmax.f32 %v592_v60, 0.0  ;;  %v605_v63 = vsel %vm444_vm3, %v601_v23, 0.0 }
 0x33f   :  { %v608_v17 = vsel %vm453_vm2, %v605_v63, -inf  ;;  %v809_v63 = vld [vmem:[%s1573_s8] sm:$0x3] }
 0x340   :  { %v641_v37 = vsel %vm453_vm2, %v1520_v61, 0.0  ;;  %v1527_v44 = vadd.f32 %v600_v62, %v430_v9  ;;  %609 = vmax.xlane.f32.xlu0 %v608_v17  ;;  %v604_v35 = vsel %vm444_vm3, %v600_v62, 0.0 }
 0x341   :  { %606 = vmax.xlane.f32.xlu1 %v604_v35 }
 0x342   :  { %v642_v2 = vadd.f32 %v641_v37, %v1527_v44 }
 0x344   :  { %v643_v3 = vrot.slane %v642_v2, 4 }
 0x346   :  { %v644_v4 = vadd.f32 %v643_v3, %v642_v2 }
 0x348   :  { %v645_v5 = vrot.slane %v644_v4, 2 }
 0x34a   :  { %v646_v21 = vadd.f32 %v645_v5, %v644_v4 }
 0x34c   :  { %v647_v6 = vrot.slane %v646_v21, 1 }
 0x34e   :  { %v648_v7 = vadd.f32 %v647_v6, %v646_v21 }
 0x350   :  { %v649_v47 = vmul.f32 0.083333336, %v648_v7 }
 0x352   :  { %v650_v48 = vsub.f32 %v1527_v44, %v649_v47  ;;  %v651_v43 = vsub.f32 %v1520_v61, %v649_v47 }
 0x354   :  { %v652_v24 = vmul.f32 %v650_v48, %v650_v48  ;;  %v653_v8 = vmul.f32 %v651_v43, %v651_v43 }
 0x356   :  { %v654_v9 = vsel %vm453_vm2, %v653_v8, 0.0 }
 0x357   :  { %v655_v45 = vadd.f32 %v654_v9, %v652_v24 }
 0x359   :  { %v656_v12 = vrot.slane %v655_v45, 4 }
 0x35b   :  { %v657_v13 = vadd.f32 %v656_v12, %v655_v45 }
 0x35d   :  { %v658_v14 = vrot.slane %v657_v13, 2 }
 0x35f   :  { %v659_v15 = vadd.f32 %v658_v14, %v657_v13 }
 0x361   :  { %v660_v54 = vrot.slane %v659_v15, 1 }
 0x363   :  { %v661_v18 = vadd.f32 %v660_v54, %v659_v15 }
 0x365   :  { %v662_v19 = vmul.f32 0.083333336, %v661_v18 }
 0x367   :  { %v663_v22 = vadd.f32 1e-05, %v662_v19 }
 0x369   :  { %1077 = vrsqrt.f32 %v663_v22 }
 0x376   :  { %v1078_v27 = vpop.eup %1077 }
 0x377   :  { %v666_v55 = vmul.f32 %v1078_v27, %v651_v43  ;;  %v665_v30 = vmul.f32 %v1078_v27, %v650_v48 }
 0x379   :  { %v678_v31 = vmul.f32 %v675_v16, %v666_v55  ;;  %v677_v32 = vmul.f32 %v670_v26, %v665_v30 }
 0x37b   :  { %v690_v34 = vadd.f32 %v687_v33, %v678_v31  ;;  %v689_v0 = vadd.f32 %v682_v20, %v677_v32 }
 0x37d   :  { %1022 = vmatprep.subr.msk.mxu1 %vm453_vm2, %v690_v34 }
 0x37e   :  { %1023 = vmatpush3.msk.msra.mxu1 %vm453_vm2, %v690_v34 }
 0x37f   :  { %1024 = vmatprep.subr.mxu1 %v689_v0 }
 0x380   :  { %1025 = vmatpush3.msra.mxu1 %v689_v0 }
 0x381   :  { %1027 = vmatmul.mubr.msk.f32.vlgmr.msra.gmra.mxu1 %vm515_vm1, %v943_v38  ;;  %1029 = vmatprep.subr.mxu1 %v1124_v25 }
 0x382   :  { %1033 = vmatprep.mubr.msk.f32.mxu1 %vm1125_vm4, %v1124_v25 }
 0x3c9   :  { %v610_v49 = vpop.xlane.xlu0 %609 }
 0x3ca   :  { %v621_v50 = vrot.slane %v610_v49, %v620_v46  ;;  %v607_v51 = vpop.xlane.xlu1 %606 }
 0x3cb   :  { %v616_v52 = vrot.slane %v607_v51, %v615_v1 }
 0x3cd   :  { %v623_v10 = vsel %vm622_vm5, %v621_v50, %v616_v52 }
 0x3ce   :  { %626 = vst.msk [vmem:[#allocation4] sm:$0x1] %vm625_vm6, %v623_v10 }
 0x441   :  { %v1028_v28 = vpop.f32.mrf.mxu1 }
 0x442   :  { %v782_v29 = vadd.f32 %v1028_v28, %v699_v42 }
 0x443   :  { %v776_v53 = vpop.f32.mrf.mxu1 }
 0x444   :  { %v786_v56 = vmax.f32 %v782_v29, 0.0  ;;  %v777_v11 = vadd.f32 %v776_v53, %v694_v41 }
 0x446   :  { %v808_v57 = vadd.f32 %v786_v56, %v1520_v61  ;;  %v785_v58 = vmax.f32 %v777_v11, 0.0  ;;  %v788_v59 = vsel %vm444_vm3, %v786_v56, 0.0 }
 0x447   :  { %v791_v23 = vsel %vm453_vm2, %v788_v59, -inf }
 0x448   :  { %v807_v60 = vadd.f32 %v785_v58, %v1527_v44  ;;  %1030 = vmatpush3.msk.msra.mxu1 %vm453_vm2, %v808_v57  ;;  %792 = vmax.xlane.f32.xlu1 %v791_v23  ;;  %v787_v62 = vsel %vm444_vm3, %v785_v58, 0.0 }
 0x449   :  { %789 = vmax.xlane.f32.xlu0 %v787_v62  ;;  %1031 = vmatprep.subr.mxu1 %v1124_v25 }
 0x44a   :  { %1032 = vmatpush3.msra.mxu1 %v807_v60 }
 0x44b   :  { %1034 = vmatmul.mubr.msk.f32.vlgmr.msra.gmra.mxu1 %vm515_vm1, %v809_v63 }
 0x4d1   :  { %v793_v61 = vpop.xlane.xlu1 %792 }
 0x4d2   :  { %v803_v17 = vrot.slane %v793_v61, %v620_v46  ;;  %v790_v37 = vpop.xlane.xlu0 %789 }
 0x4d3   :  { %v799_v44 = vrot.slane %v790_v37, %v615_v1 }
 0x4d5   :  { %v804_v35 = vsel %vm622_vm5, %v803_v17, %v799_v44 }
 0x4d6   :  { %806 = vst.msk [vmem:[#allocation4 + $0x1] sm:$0x1] %vm625_vm6, %v804_v35 }
 0x4d7   :  { %1090 = shalt.err (!%p1087_p4)
}
 0x4d8   :  { %906 = dma.vmem_to_hbm [thread:$0]  %s904_s19, 32, %s1575_s10, [#allocation5]  }
 0x4d9   :  { %s1127_s22 = smov [#allocation2]  }
 0x4da   :  { %s893_s23 = sshll.u32 %s1127_s22, 4  ;;  %s894_s23 = int_to_ptr.vmem [resolvable:$true] %s893_s23 }
 0x4db   :  { %s1099_s24 = scalar_lea.vmem %s894_s23, 32  ;;  %p1104_p6 = scmp.lt.s32.totalorder %s894_s23, %s894_s23 }
 0x4dc   :  { %p1100_p5 = scmp.ne.s32.totalorder %s894_s23, %s1099_s24  ;;  %p1105_p7 = scmp.lt.s32.totalorder %s1099_s24, %s1099_s24 }
 0x4de   :  { %p1106_p8 = por %p1105_p7, %p1104_p6 }
 0x4e0   :  { %p1107_p9 = pnand %p1106_p8, %p1100_p5 }
 0x50b   :  { %v882_v36 = vpop.f32.mrf.mxu1 }
 0x50c   :  { %886 = vst [vmem:[#allocation2] sm:$0x3] %v882_v36 }
 0x50d   :  { %v1035_v2 = vpop.f32.mrf.mxu1 }
 0x50e   :  { %1110 = shalt.err (!%p1107_p9)
}
 0x50f   :  { %896 = dma.vmem_to_hbm [thread:$0]  %s894_s23, 32, %s1574_s9, [#allocation3]  }
 0x510   :  { %1119 = dma.done.wait [#allocation3], 32  }
 0x511   :  { %1120 = vsyncadd [#allocation3], 4294967264 }
 0x512   :  { %1121 = dma.done.wait [#allocation5], 32  }
 0x513   :  { %1122 = vsyncadd [#allocation5], 4294967264 }
 0x514   :  { %913 = vsyncpa [#allocation3], 1 }
 0x515   :  { %914 = vsyncpa [#allocation5], 1 }

</bundles_post_ra>
